<compile_context>
chip_gen: v5e
topology: v5e:2x2
jax: 0.10.0
libtpu: 0.0.40
codegen_flags: <defaults>
</compile_context>

<pallas_src>
import jax
import jax.numpy as jnp
from jax.experimental import pallas as pl
from jax.experimental.pallas import tpu as pltpu


# ----------------------------- Pallas kernel ------------------------------

def _cpc_fused_kernel(x_ref, w_ref, b_ref, m_ref, tgt_ref, o_ref, xp_ref):
    # x_ref  : (C, BTp)     bf16  context features; channels on sublanes, flat b*T on lanes
    # w_ref  : (S*O, C)     bf16  step-major projection weights (O == C), fused over steps
    # b_ref  : (S*O, 1)     f32   projection bias (tiled over steps)
    # m_ref  : (S, BTp)     f32   1.0 where t + s < T and j < B*T, else 0.0
    # tgt_ref: (1, C, BTp)  bf16  this grid step's target copy
    # o_ref  : (1, S, BTp)  f32   scores[copy, s, j]
    # xp_ref : (S*O, BTp)   f32   scratch: projected features (written once at n == 0)
    S, BTp = m_ref.shape
    O = xp_ref.shape[0] // S
    n = pl.program_id(0)

    # (1) projection: a single fused MXU matmul, only on the first grid step;
    #     the scratch persists across the whole copies grid (never hits HBM).
    @pl.when(n == 0)
    def _():
        xp_ref[...] = (
            jnp.dot(w_ref[...], x_ref[...], preferred_element_type=jnp.float32)
            + b_ref[...]                                    # lane-broadcast bias
        )

    # (2) score this copy's targets against every prediction step.
    tg = tgt_ref[0].astype(jnp.float32)                     # (C, BTp); f32 VPU math (v5e-safe)
    rows = []
    for s in range(S):                                      # S is small -> static unroll
        if s == 0:
            tg_s = tg
        else:
            # tg_s[c, j] = tg[c, (j + s) mod BTp]: cheap XLU lane rotation.
            # The mask zeroes every wrapped / cross-sequence (t + s >= T) lane.
            tg_s = pltpu.roll(tg, shift=BTp - s, axis=1)
        xp_s = xp_ref[pl.ds(s * O, O), :]                   # (O, BTp), static offset
        rows.append(jnp.sum(xp_s * tg_s, axis=0, keepdims=True))
    # one lane- and sublane-dense store for all S rows of this copy.
    o_ref[0] = jnp.concatenate(rows, axis=0) * m_ref[...]


# ------------------------------- wrapper -----------------------------------

def _vmem_limit_bytes():
    """Per-generation VMEM budget with headroom (don't hardcode 32 MiB)."""
    try:
        cap = int(pltpu.get_tpu_info().vmem_capacity_bytes)
    except Exception:
        cap = 64 * 1024 * 1024           # conservative (v7x-sized) fallback
    return min((cap * 3) // 4, 100 * 1024 * 1024)


def cpc_scores(x_agg, w_flat, bias_flat, targets_cbt):
    """Fused ConvTranspose2d(1,S) projection + CPC scoring.

    x_agg      : (B, C, T)        f32  aggregated ("context") features
    w_flat     : (S*O, C)         bf16 step-major projection weights (O == C)
    bias_flat  : (S*O, 1)         f32
    targets_cbt: (copies, C, B*T) f32  positive copy first, then negatives,
                                       already in channel-major / flat-(b,t) layout

    Returns scores (copies, S, B, T) f32 with
      scores[n, s, b, t] = sum_c proj(x_agg)[b, c, t, s] * targets[n, c, b*T + t + s]
    and 0 where t + s >= T.
    """
    B, C, T = x_agg.shape
    SO, Cw = w_flat.shape
    assert Cw == C and SO % C == 0, "CPC scoring requires odim == idim"
    S = SO // C
    copies = targets_cbt.shape[0]
    BT = B * T
    assert targets_cbt.shape == (copies, C, BT)
    BTp = pl.cdiv(BT, 128) * 128          # lane-dense flattened position axis

    # channel-major, flattened (b, t) on the lane axis, zero-padded to BTp, bf16.
    x_cbt = jnp.transpose(x_agg, (1, 0, 2)).reshape(C, BT)
    x_cbt = jnp.pad(x_cbt, ((0, 0), (0, BTp - BT))).astype(jnp.bfloat16)
    tg_cbt = jnp.pad(targets_cbt, ((0, 0), (0, 0), (0, BTp - BT))).astype(jnp.bfloat16)

    # validity mask: lane j = b*T + t is valid for step s iff t + s < T.
    j = jnp.arange(BTp)
    t_in_batch = jnp.where(j < BT, j % T, T)       # sentinel => padded lanes never valid
    mask = ((t_in_batch[None, :] + jnp.arange(S)[:, None]) < T).astype(jnp.float32)

    # TODO(synk): for production B*T on v7x (64 MiB VMEM, 2 TCs) add a second,
    # "parallel" grid axis tiling the lane (BTp) dimension with a +S halo on the
    # target blocks, and optionally pipeline_mode=pl.Buffered(3) on the targets
    # spec for v5e.  Unnecessary at these demo shapes.
    out = pl.pallas_call(
        _cpc_fused_kernel,
        out_shape=jax.ShapeDtypeStruct((copies, S, BTp), jnp.float32),
        grid=(copies,),
        in_specs=[
            pl.BlockSpec((C, BTp), lambda n: (0, 0)),        # x: fetched once
            pl.BlockSpec((SO, C), lambda n: (0, 0)),         # weights: fetched once
            pl.BlockSpec((SO, 1), lambda n: (0, 0)),         # bias: fetched once
            pl.BlockSpec((S, BTp), lambda n: (0, 0)),        # mask: fetched once
            pl.BlockSpec((1, C, BTp), lambda n: (n, 0, 0)),  # this copy's targets
        ],
        out_specs=pl.BlockSpec((1, S, BTp), lambda n: (n, 0, 0)),
        scratch_shapes=[pltpu.VMEM((SO, BTp), jnp.float32)],
        # copies axis must stay "arbitrary": the projection scratch is written
        # at n == 0 and reused by later grid steps.
        compiler_params=pltpu.CompilerParams(
            dimension_semantics=("arbitrary",),
            vmem_limit_bytes=_vmem_limit_bytes(),
        ),
    )(x_cbt, w_flat, bias_flat, mask, tg_cbt)

    return out[:, :, :BT].reshape(copies, S, B, T)


def sample_negatives_cbt(key, y, n_negatives, cross_sample_negatives, sample_distance):
    """Port of Wav2VecPredictionsModel.sample_negatives (torch RNG -> jax.random).

    Returns negatives directly in the kernel's (N, C, B*T) layout (flat index
    j = b*T + t), so the big tensor never needs a host-side relayout.
    """
    bsz, fsz, tsz = y.shape
    y_flat = jnp.transpose(y, (1, 0, 2)).reshape(fsz, bsz * tsz)  # C x (B*T)
    cross_high = tsz * bsz
    high = tsz if sample_distance is None else min(tsz, sample_distance)
    assert high > 1
    k1, k2 = jax.random.split(key)

    neg_idxs = None
    if n_negatives > 0:
        tszs = jnp.repeat(jnp.arange(tsz), n_negatives)
        neg_idxs = jax.random.randint(k1, (bsz, n_negatives * tsz), 0, high - 1)
        neg_idxs = jnp.where(neg_idxs >= tszs[None, :], neg_idxs + 1, neg_idxs)
        neg_idxs = neg_idxs + (jnp.arange(bsz) * high)[:, None]

    cross_neg_idxs = None
    if cross_sample_negatives > 0:
        tszs_c = jnp.repeat(jnp.arange(tsz), cross_sample_negatives)
        cross_neg_idxs = jax.random.randint(
            k2, (bsz, cross_sample_negatives * tsz), 0, cross_high - 1
        )
        cross_neg_idxs = jnp.where(
            cross_neg_idxs >= tszs_c[None, :], cross_neg_idxs + 1, cross_neg_idxs
        )

    if n_negatives == 0:
        neg_idxs = cross_neg_idxs
    elif cross_sample_negatives > 0:
        neg_idxs = jnp.concatenate([neg_idxs, cross_neg_idxs], axis=1)

    n_tot = n_negatives + cross_sample_negatives
    # Same index mapping as the original `.view(fsz, bsz, n_tot, tsz).permute(...)`,
    # but the gather writes the (N, C, b*T + t) layout directly.
    idx_nbt = jnp.transpose(neg_idxs.reshape(bsz, n_tot, tsz), (1, 0, 2)).reshape(
        n_tot, bsz * tsz
    )
    negs = y_flat[jnp.arange(fsz)[None, :, None], idx_nbt[:, None, :]]  # (N, C, B*T)
    return negs


class FairInferencePallas:
    """FairInference forward: result = {'cpc_logits', 'cpc_targets'}."""

    def __init__(self, idim, odim, *, hdim=32, tnum=1, bias=True,
                 prediction_steps=4, num_negatives=3, cross_sample_negatives=0,
                 sample_distance=None, dropout=0.0, balanced_classes=False,
                 infonce=True, seed=0):
        assert idim == odim, "CPC dot product requires odim == idim"
        self.idim, self.odim, self.hdim, self.tnum, self.bias = idim, odim, hdim, tnum, bias
        self.prediction_steps = prediction_steps
        self.n_negatives = num_negatives
        self.cross_sample_negatives = cross_sample_negatives
        self.sample_distance = sample_distance
        self.balanced_classes = balanced_classes
        self.infonce = infonce
        self.offset = 0  # FairInference passes offset=0 to Wav2VecPredictionsModel
        # TODO(synk): dropout omitted -- p is treated as 0.0 / eval mode (identity).
        kw, kb = jax.random.split(jax.random.PRNGKey(seed))
        # ConvTranspose2d weight: (in, out, kH=1, kW=prediction_steps), bias: (out,)
        self.proj_w = 0.1 * jax.random.normal(
            kw, (idim, odim, 1, prediction_steps), jnp.float32
        )
        self.proj_b = 0.01 * jax.random.normal(kb, (odim,), jnp.float32)
        # Kernel-friendly parameter layouts, prepared once at init:
        #   fused step-major weights (S*O, C) in bf16, bias tiled to (S*O, 1) f32.
        w_soc = jnp.transpose(self.proj_w[:, :, 0, :], (2, 1, 0))       # (S, O, C)
        self.w_flat = w_soc.reshape(prediction_steps * odim, idim).astype(jnp.bfloat16)
        self.bias_flat = jnp.tile(self.proj_b, prediction_steps).reshape(
            prediction_steps * odim, 1
        )

    def __call__(self, x, x_agg, *, rng):
        # x, x_agg : (B, C, T)
        B, C, T = x.shape

        # negatives sampled directly in the kernel's (N, C, B*T) layout; only the
        # small positive copy needs a host-side relayout.
        negs_cbt = sample_negatives_cbt(
            rng, x, self.n_negatives, self.cross_sample_negatives, self.sample_distance
        )
        pos_cbt = jnp.transpose(x, (1, 0, 2)).reshape(1, C, B * T)
        targets_cbt = jnp.concatenate([pos_cbt, negs_cbt], axis=0)   # (copies, C, B*T)
        copies = targets_cbt.shape[0]

        # fused projection + scoring:  (copies, S, B, T)
        scores = cpc_scores(x_agg, self.w_flat, self.bias_flat, targets_cbt)

        steps = min(self.prediction_steps, T - self.offset)
        # NOTE: step i uses offset = i + self.offset; with self.offset == 0 the
        # i == 0 case takes the full time axis (the count formula in the original
        # code implies this; PyTorch's `x[..., :-0, i]` is its only inconsistency).
        if self.infonce:
            chunks = []
            for i in range(steps):
                L = T - (i + self.offset)
                s_i = scores[:, i, :, :L]                    # (copies, B, L)
                # einsum 'bct,nbct->tbn' flatten order: (t, b, n)
                chunks.append(jnp.transpose(s_i, (2, 1, 0)).reshape(-1))
            predictions = jnp.concatenate(chunks).reshape(-1, copies)
            labels = jnp.zeros((predictions.shape[0],), dtype=jnp.int32)
        else:
            chunks, lab_chunks, w_chunks = [], [], []
            for i in range(steps):
                L = T - (i + self.offset)
                s_i = scores[:, i, :, :L]                    # (copies, B, L)
                chunk = s_i.reshape(-1)                      # 'nbt' order
                chunks.append(chunk)
                pos_num = B * L
                lab = jnp.zeros_like(chunk).at[:pos_num].set(1.0)
                lab_chunks.append(lab)
                if self.balanced_classes:
                    w = jnp.full_like(chunk, 1.0 / self.n_negatives).at[:pos_num].set(1.0)
                    w_chunks.append(w)
            predictions = jnp.concatenate(chunks)
            labels = jnp.concatenate(lab_chunks)
            if self.balanced_classes:
                labels = (labels, jnp.concatenate(w_chunks))

        return {"cpc_logits": predictions, "cpc_targets": labels}


if __name__ == "__main__":
    B, C, T = 2, 16, 12          # x : B C T (idim == odim == C so the CPC dot works)
    S, N_NEG = 4, 3

    key = jax.random.PRNGKey(0)
    kx, kagg, kneg = jax.random.split(key, 3)
    x = jax.random.normal(kx, (B, C, T), jnp.float32)
    x_agg = jax.random.normal(kagg, (B, C, T), jnp.float32)

    model = FairInferencePallas(
        idim=C, odim=C, prediction_steps=S, num_negatives=N_NEG,
        cross_sample_negatives=0, sample_distance=None, dropout=0.0,
        balanced_classes=False, infonce=True, seed=0,
    )

    result = model(x, x_agg, rng=kneg)
    logits = jax.block_until_ready(result["cpc_logits"])
    labels = jax.block_until_ready(result["cpc_targets"])

    copies = 1 + N_NEG
    expected_rows = sum((T - i) * B for i in range(S))
    assert logits.shape == (expected_rows, copies), logits.shape
    assert labels.shape == (expected_rows,), labels.shape
    assert bool(jnp.all(jnp.isfinite(logits)))

    # Numerical check of the fused kernel against a pure-JAX reference
    # (same bf16-rounded inputs, so only accumulation-order noise remains).
    negs_cbt = sample_negatives_cbt(kneg, x, N_NEG, 0, None)
    pos_cbt = jnp.transpose(x, (1, 0, 2)).reshape(1, C, B * T)
    tg_cbt = jnp.concatenate([pos_cbt, negs_cbt], axis=0)            # (copies, C, B*T)
    scores = jax.block_until_ready(
        cpc_scores(x_agg, model.w_flat, model.bias_flat, tg_cbt)
    )

    w_f = model.w_flat.astype(jnp.float32).reshape(S, C, C)          # (S, O, C)
    x_f = x_agg.astype(jnp.bfloat16).astype(jnp.float32)
    tg4 = tg_cbt.astype(jnp.bfloat16).astype(jnp.float32).reshape(copies, C, B, T)
    xp = jnp.einsum("soc,bct->sbot", w_f, x_f,
                    precision=jax.lax.Precision.HIGHEST) + model.proj_b[None, None, :, None]
    ref = jnp.zeros((copies, S, B, T), jnp.float32)
    for s in range(S):
        L = T - s
        val = jnp.einsum("bct,ncbt->nbt", xp[s, :, :, :L], tg4[:, :, :, s:s + L],
                         precision=jax.lax.Precision.HIGHEST)
        ref = ref.at[:, s, :, :L].set(val)
    assert bool(jnp.allclose(scores, ref, rtol=5e-2, atol=5e-2)), \
        float(jnp.max(jnp.abs(scores - ref)))

    print("KERNEL_OK")
</pallas_src>

<mosaic_0001>
module attributes {stable_mosaic.version = 11 : i64} {
  func.func @_cpc_fused_kernel(%arg0: i32, %arg1: memref<16x128xbf16, #tpu.memory_space<vmem>>, %arg2: memref<64x16xbf16, #tpu.memory_space<vmem>>, %arg3: memref<64x1xf32, #tpu.memory_space<vmem>>, %arg4: memref<4x128xf32, #tpu.memory_space<vmem>>, %arg5: memref<1x16x128xbf16, #tpu.memory_space<vmem>>, %arg6: memref<1x4x128xf32, #tpu.memory_space<vmem>>, %arg7: memref<64x128xf32, #tpu.memory_space<vmem>>) attributes {dimension_semantics = [#tpu.dimension_semantics<arbitrary>], iteration_bounds = array<i64: 4>, scalar_prefetch = 0 : i64, scratch_operands = 1 : i64, tpu.core_type = #tpu.core_type<tc>, window_params = [{pipeline_mode = #tpu.pipeline_mode<synchronous>, transform_indices = @transform_0, window_bounds = array<i64: 16, 128>}, {pipeline_mode = #tpu.pipeline_mode<synchronous>, transform_indices = @transform_1, window_bounds = array<i64: 64, 16>}, {pipeline_mode = #tpu.pipeline_mode<synchronous>, transform_indices = @transform_2, window_bounds = array<i64: 64, 1>}, {pipeline_mode = #tpu.pipeline_mode<synchronous>, transform_indices = @transform_3, window_bounds = array<i64: 4, 128>}, {transform_indices = @transform_4, window_bounds = array<i64: 1, 16, 128>}, {transform_indices = @transform_5, window_bounds = array<i64: 1, 4, 128>}]} {
    %c0_i32 = arith.constant 0 : i32
    %0 = arith.cmpi eq, %arg0, %c0_i32 : i32
    %1 = arith.extui %0 : i1 to i32
    %c0_i32_0 = arith.constant 0 : i32
    %2 = arith.cmpi ne, %1, %c0_i32_0 : i32
    scf.if %2 {
      %c0_16 = arith.constant 0 : index
      %c0_17 = arith.constant 0 : index
      %31 = vector.load %arg2[%c0_16, %c0_17] : memref<64x16xbf16, #tpu.memory_space<vmem>>, vector<64x16xbf16>
      %c0_18 = arith.constant 0 : index
      %c0_19 = arith.constant 0 : index
      %32 = vector.load %arg1[%c0_18, %c0_19] : memref<16x128xbf16, #tpu.memory_space<vmem>>, vector<16x128xbf16>
      %cst_20 = arith.constant dense<0.000000e+00> : vector<64x128xf32>
      %33 = tpu.matmul %31, %32, %cst_20 {dimension_numbers = #tpu.dot_dimension_numbers<[1], [0], [0], [1], [0, 0, 1, 1], [], []>} : vector<64x16xbf16>, vector<16x128xbf16>, vector<64x128xf32> -> vector<64x128xf32>
      %c0_21 = arith.constant 0 : index
      %c0_22 = arith.constant 0 : index
      %34 = vector.load %arg3[%c0_21, %c0_22] : memref<64x1xf32, #tpu.memory_space<vmem>>, vector<64x1xf32>
      %35 = vector.broadcast %34 : vector<64x1xf32> to vector<64x128xf32>
      %36 = arith.addf %33, %35 : vector<64x128xf32>
      %c0_23 = arith.constant 0 : index
      %c0_24 = arith.constant 0 : index
      %37 = vector.load %arg7[%c0_23, %c0_24] : memref<64x128xf32, #tpu.memory_space<vmem>>, vector<64x128xf32>
      tpu.vector_store %arg7[%c0_23, %c0_24], %36 {strides = array<i32>} : memref<64x128xf32, #tpu.memory_space<vmem>>, vector<64x128xf32>,
    } else {
    }
    %c0 = arith.constant 0 : index
    %c0_1 = arith.constant 0 : index
    %c0_2 = arith.constant 0 : index
    %3 = vector.load %arg5[%c0, %c0_1, %c0_2] : memref<1x16x128xbf16, #tpu.memory_space<vmem>>, vector<1x16x128xbf16>
    %4 = vector.shape_cast %3 : vector<1x16x128xbf16> to vector<16x128xbf16>
    %5 = arith.extf %4 : vector<16x128xbf16> to vector<16x128xf32>
    %c0_3 = arith.constant 0 : index
    %c0_4 = arith.constant 0 : index
    %6 = vector.load %arg7[%c0_3, %c0_4] : memref<64x128xf32, #tpu.memory_space<vmem>>, vector<16x128xf32>
    %7 = arith.mulf %6, %5 : vector<16x128xf32>
    %cst = arith.constant dense<0.000000e+00> : vector<128xf32>
    %8 = vector.multi_reduction <add>, %7, %cst [0] : vector<16x128xf32> to vector<128xf32>
    %9 = vector.shape_cast %8 : vector<128xf32> to vector<1x128xf32>
    %c127_i32 = arith.constant 127 : i32
    %10 = tpu.dynamic_rotate %5 by %c127_i32 dim 1 : vector<16x128xf32>, i32 -> vector<16x128xf32>
    %c16 = arith.constant 16 : index
    %c0_5 = arith.constant 0 : index
    %11 = vector.load %arg7[%c16, %c0_5] : memref<64x128xf32, #tpu.memory_space<vmem>>, vector<16x128xf32>
    %12 = arith.mulf %11, %10 : vector<16x128xf32>
    %cst_6 = arith.constant dense<0.000000e+00> : vector<128xf32>
    %13 = vector.multi_reduction <add>, %12, %cst_6 [0] : vector<16x128xf32> to vector<128xf32>
    %14 = vector.shape_cast %13 : vector<128xf32> to vector<1x128xf32>
    %c126_i32 = arith.constant 126 : i32
    %15 = tpu.dynamic_rotate %5 by %c126_i32 dim 1 : vector<16x128xf32>, i32 -> vector<16x128xf32>
    %c32 = arith.constant 32 : index
    %c0_7 = arith.constant 0 : index
    %16 = vector.load %arg7[%c32, %c0_7] : memref<64x128xf32, #tpu.memory_space<vmem>>, vector<16x128xf32>
    %17 = arith.mulf %16, %15 : vector<16x128xf32>
    %cst_8 = arith.constant dense<0.000000e+00> : vector<128xf32>
    %18 = vector.multi_reduction <add>, %17, %cst_8 [0] : vector<16x128xf32> to vector<128xf32>
    %19 = vector.shape_cast %18 : vector<128xf32> to vector<1x128xf32>
    %c125_i32 = arith.constant 125 : i32
    %20 = tpu.dynamic_rotate %5 by %c125_i32 dim 1 : vector<16x128xf32>, i32 -> vector<16x128xf32>
    %c48 = arith.constant 48 : index
    %c0_9 = arith.constant 0 : index
    %21 = vector.load %arg7[%c48, %c0_9] : memref<64x128xf32, #tpu.memory_space<vmem>>, vector<16x128xf32>
    %22 = arith.mulf %21, %20 : vector<16x128xf32>
    %cst_10 = arith.constant dense<0.000000e+00> : vector<128xf32>
    %23 = vector.multi_reduction <add>, %22, %cst_10 [0] : vector<16x128xf32> to vector<128xf32>
    %24 = vector.shape_cast %23 : vector<128xf32> to vector<1x128xf32>
    %25 = tpu.concatenate %9, %14, %19, %24 in 0 : vector<1x128xf32>, vector<1x128xf32>, vector<1x128xf32>, vector<1x128xf32> -> vector<4x128xf32>
    %c0_11 = arith.constant 0 : index
    %c0_12 = arith.constant 0 : index
    %26 = vector.load %arg4[%c0_11, %c0_12] : memref<4x128xf32, #tpu.memory_space<vmem>>, vector<4x128xf32>
    %27 = arith.mulf %25, %26 : vector<4x128xf32>
    %c0_13 = arith.constant 0 : index
    %c0_14 = arith.constant 0 : index
    %c0_15 = arith.constant 0 : index
    %28 = vector.load %arg6[%c0_13, %c0_14, %c0_15] : memref<1x4x128xf32, #tpu.memory_space<vmem>>, vector<1x4x128xf32>
    %29 = vector.shape_cast %28 : vector<1x4x128xf32> to vector<4x128xf32>
    %30 = vector.shape_cast %27 : vector<4x128xf32> to vector<1x4x128xf32>
    tpu.vector_store %arg6[%c0_13, %c0_14, %c0_15], %30 {strides = array<i32>} : memref<1x4x128xf32, #tpu.memory_space<vmem>>, vector<1x4x128xf32>,
    return
  }
  func.func @transform_0(%arg0: i32) -> (i32, i32) {
    %c0_i32 = arith.constant 0 : i32
    %c0_i32_0 = arith.constant 0 : i32
    %c0_i32_1 = arith.constant 0 : i32
    return %c0_i32, %c0_i32_0 : i32, i32
  }
  func.func @transform_1(%arg0: i32) -> (i32, i32) {
    %c0_i32 = arith.constant 0 : i32
    %c0_i32_0 = arith.constant 0 : i32
    %c0_i32_1 = arith.constant 0 : i32
    return %c0_i32, %c0_i32_0 : i32, i32
  }
  func.func @transform_2(%arg0: i32) -> (i32, i32) {
    %c0_i32 = arith.constant 0 : i32
    %c0_i32_0 = arith.constant 0 : i32
    %c0_i32_1 = arith.constant 0 : i32
    return %c0_i32, %c0_i32_0 : i32, i32
  }
  func.func @transform_3(%arg0: i32) -> (i32, i32) {
    %c0_i32 = arith.constant 0 : i32
    %c0_i32_0 = arith.constant 0 : i32
    %c0_i32_1 = arith.constant 0 : i32
    return %c0_i32, %c0_i32_0 : i32, i32
  }
  func.func @transform_4(%arg0: i32) -> (i32, i32, i32) {
    %c0_i32 = arith.constant 0 : i32
    %c0_i32_0 = arith.constant 0 : i32
    %c0_i32_1 = arith.constant 0 : i32
    return %arg0, %c0_i32, %c0_i32_0 : i32, i32, i32
  }
  func.func @transform_5(%arg0: i32) -> (i32, i32, i32) {
    %c0_i32 = arith.constant 0 : i32
    %c0_i32_0 = arith.constant 0 : i32
    %c0_i32_1 = arith.constant 0 : i32
    return %arg0, %c0_i32, %c0_i32_0 : i32, i32, i32
  }
}

</mosaic_0001>

<bundles_post_ra>
// kernel: tpu_custom_call.1
= control target key start
LH: loop header
LB: loop body
LE: loop exit
PB: predicated region body
PF: predicated region fallthrough
CT: control target
= control target key end

     0   :  { %10 = vsyncpa [#allocation4], 0  ;;  %s856_s0 = inlined_call_operand.vmem [shape: bf16[16,128], index: 0, kind: input, shape index: {}]   ;;  %s857_s1 = inlined_call_operand.vmem [shape: bf16[64,16], index: 1, kind: input, shape index: {}]   ;;  %s858_s2 = inlined_call_operand.vmem [shape: f32[64,1], index: 2, kind: input, shape index: {}]   ;;  %s859_s3 = inlined_call_operand.vmem [shape: f32[4,128], index: 3, kind: input, shape index: {}]   ;;  %s860_s4 = inlined_call_operand.vmem [shape: bf16[4,16,128], index: 4, kind: input, shape index: {}]   ;;  %s861_s5 = inlined_call_operand.hbm [shape: f32[4,4,128], index: 5, kind: output, shape index: {}]  }
   0x1   :  { %12 = vsyncpa [#allocation4 + $0x1], 0  ;;  %s714_s18 = smov 0   ;;  %s716_s19 = smov 0  }
   0x2   :  { %s718_s20 = smov 0   ;;  %s720_s21 = smov 0  }
   0x3 LB: > { %s735_s22 = sadd.s32 4294967295, %s678_s21   ;;  %s506_s23 = sadd.s32 4294967294, %s678_s21   ;;  %s678_s21 = sphi %s720_s21, %s867_s21   ;;  %s674_s20 = sphi %s718_s20, %s866_s20   ;;  %s670_s19 = sphi %s716_s19, %s865_s19   ;;  %s666_s18 = sphi %s714_s18, %s864_s18  }
   0x4   : > { %s739_s24 = sadd.s32 1, %s678_s21   ;;  %s135_s25 = sadd.s32 1, %s674_s20 }
   0x5   : > { %s132_s26 = ssub.s32 %s678_s21, %s739_s24  ;;  %p145_p0 = scmp.ne.s32.totalorder %s674_s20, %s670_s19 }
   0x6   : > { %p133_p1 = scmp.eq.s32.totalorder %s132_s26, 0  ;;  %p146_p2 = scmp.eq.s32.totalorder %s735_s22, 3 }
   0x7   : > { %p151_p3 = scmp.ne.s32.totalorder %s670_s19, %s666_s18  ;;  %p152_p4 = scmp.eq.s32.totalorder %s506_s23, 3 }
   0x8   : > { %s750_s27 = scalar_select %p133_p1, %s674_s20, %s135_s25  }
   0x9   : > { %p752_p5 = por %p146_p2, %p145_p0  ;;  %p756_p6 = por %p152_p4, %p151_p3 }
   0xa   : > { %p509_p7 = scmp.ge.s32.totalorder %s678_s21, 1  ;;  %p190_p8 = scmp.lt.s32.totalorder %s678_s21, 5 }
   0xc   : > { %p191_p9 = pnand %p509_p7, %p190_p8 }
   0xd   : > { %s215_s30 = sand.u32 (!%p191_p9), 1, %s670_s19   ;;  %p218_p10 = scmp.lt.s32.totalorder (!%p191_p9), %s735_s22, 3 }
   0xe   : > { %194 = sbr.rel (%p191_p9) target bundleno = 329 (0x149), region = 40  ;;  %s766_s6 = sshll.u32 (!%p191_p9), %s215_s30, 2 }
   0xf   : > { %s217_s12 = scalar_lea.vmem (!%p191_p9), [#allocation3], %s766_s6  ;;  %p513_p11 = scmp.ne.s32.totalorder (!%p191_p9), %s735_s22, 0 }
  0x13   : > { %s219_s7 = scalar_select %p218_p10, %s735_s22, 3 }
  0x14   : > { %227 = sbr.rel (%p513_p11) target bundleno = 176 (0xb0), region = 44 }
  0x15   : > { %s542_s8 = sshll.u32 %s219_s7, 3 }
  0x16   : > { %s772_s11 = scalar_lea.vmem %s860_s4, %s542_s8 }
  0x19   : > { %v240_v0 = vld [vmem:[%s858_s2 + $0x10] sm:$0xff]  ;;  %v238_v1 = vld [vmem:[%s858_s2] sm:$0xff]  ;;  %v680_v3 = vmov 0   ;;  %v544_v5 = vld [vmem:[%s857_s1 + $0x8] sm:$0xff]  ;;  %vm312_vm0 = vcmask 130048  }
  0x1a   : > { %v547_v2 = vld [vmem:[%s856_s0] sm:$0xff]  ;;  %599 = vset.pattern.permute.xlu1 %v680_v3  ;;  %598 = vset.pattern.permute.xlu0 %v680_v3  ;;  %v545_v6 = vld [vmem:[%s857_s1 + $0x10] sm:$0xff]  ;;  %v546_v7 = vld [vmem:[%s857_s1 + $0x18] sm:$0xff] }
  0x1b   : > { %258 = vperm.xlu1 %599, %v240_v0   ;;  %248 = vperm.xlu0 %598, %v238_v1   ;;  %v543_v4 = vld [vmem:[%s857_s1] sm:$0xff]  ;;  %v241_v9 = vld [vmem:[%s858_s2 + $0x18] sm:$0xff]  ;;  %v239_v10 = vld [vmem:[%s858_s2 + $0x8] sm:$0xff] }
  0x1c   : > { %332 = vmatpush.bf16.msra.mxu0 %v547_v2  ;;  %552 = vmatpush.bf16.msra.mxu1 %v547_v2  ;;  %v242_v8 = vld [vmem:[%s858_s2 + $0x20] sm:$0xff]  ;;  %v243_v11 = vld [vmem:[%s858_s2 + $0x28] sm:$0xff]  ;;  %v245_v12 = vld [vmem:[%s858_s2 + $0x38] sm:$0xff] }
  0x1d   : > { %553 = vmatpush.bf16.msra.mxu2 %v547_v2  ;;  %554 = vmatpush.bf16.msra.mxu3 %v547_v2  ;;  %v244_v13 = vld [vmem:[%s858_s2 + $0x30] sm:$0xff] }
  0x1e   : > { %600 = vset.pattern.permute.xlu2 %v680_v3 }
  0x1f   : > { %534 = vmatmul.msk.bf16.vlgmr.msra.gmra.mxu0 %vm312_vm0, %v543_v4  ;;  %535 = vmatmul.msk.bf16.vlgmr.msra.gmra.mxu1 %vm312_vm0, %v544_v5 }
  0x20   : > { %536 = vmatmul.msk.bf16.vlgmr.msra.gmra.mxu2 %vm312_vm0, %v545_v6  ;;  %537 = vmatmul.msk.bf16.vlgmr.msra.gmra.mxu3 %vm312_vm0, %v546_v7 }
  0x21   : > { %268 = vperm.xlu2 %600, %v242_v8  }
  0x23   : > { %263 = vperm.xlu1 %599, %v241_v9   ;;  %253 = vperm.xlu0 %598, %v239_v10  }
  0x29   : > { %273 = vperm.xlu2 %600, %v243_v11  }
  0x2b   : > { %283 = vperm.xlu1 %599, %v245_v12   ;;  %278 = vperm.xlu0 %598, %v244_v13  }
  0x7b   : > { %v269_v22 = vpop.permute.xlu2 %268 }
  0x83   : > { %v274_v33 = vpop.permute.xlu2 %273 }
  0x8d   : > { %v249_v14 = vpop.permute.xlu0 %248  ;;  %v259_v15 = vpop.permute.xlu1 %258 }
  0x95   : > { %v254_v16 = vpop.permute.xlu0 %253  ;;  %v264_v21 = vpop.permute.xlu1 %263 }
  0x9c   : > { %v334_v17 = vpop.f32.mrf.mxu0  ;;  %v339_v18 = vpop.f32.mrf.mxu1 }
  0x9d   : > { %v335_v19 = vadd.f32 %v334_v17, %v249_v14  ;;  %v340_v20 = vadd.f32 %v339_v18, %v259_v15  ;;  %v279_v23 = vpop.permute.xlu0 %278  ;;  %v284_v32 = vpop.permute.xlu1 %283 }
  0x9f   : > { %354 = vst [vmem:[#allocation2 + $0x30] sm:$0xff] %v335_v19 }
  0xa0   : > { %356 = vst [vmem:[#allocation2 + $0x18] sm:$0xff] %v340_v20 }
  0xa3   : > { %v344_v24 = vpop.f32.mrf.mxu2  ;;  %v349_v25 = vpop.f32.mrf.mxu3 }
  0xa4   : > { %v345_v26 = vadd.f32 %v344_v24, %v269_v22  ;;  %v350_v27 = vadd.f32 %v349_v25, %v279_v23  ;;  %v336_v28 = vpop.f32.mrf.mxu0  ;;  %v341_v29 = vpop.f32.mrf.mxu1 }
  0xa5   : > { %v337_v30 = vadd.f32 %v336_v28, %v254_v16  ;;  %v342_v31 = vadd.f32 %v341_v29, %v264_v21 }
  0xa6   : > { %358 = vst [vmem:[#allocation2 + $0x8] sm:$0xff] %v345_v26 }
  0xa7   : > { %360 = vst [vmem:[#allocation2 + $0x28] sm:$0xff] %v350_v27 }
  0xa8   : > { %355 = vst [vmem:[#allocation2] sm:$0xff] %v337_v30 }
  0xa9   : > { %357 = vst [vmem:[#allocation2 + $0x10] sm:$0xff] %v342_v31 }
  0xab   : > { %v346_v34 = vpop.f32.mrf.mxu2  ;;  %v351_v35 = vpop.f32.mrf.mxu3 }
  0xac   : > { %v347_v36 = vadd.f32 %v346_v34, %v274_v33  ;;  %v352_v37 = vadd.f32 %v351_v35, %v284_v32 }
  0xae   : > { %359 = vst [vmem:[#allocation2 + $0x20] sm:$0xff] %v347_v36 }
  0xaf   : > { %361 = vst [vmem:[#allocation2 + $0x38] sm:$0xff] %v352_v37 }
  0xb0 PF: > { %v549_v38 = vld [vmem:[%s772_s11] sm:$0xff]   ;;  %v366_v39 = vld [vmem:[#allocation2 + $0x30] sm:$0xff]  ;;  %s681_s15 = smov 127   ;;  %s682_s16 = smov 125   ;;  %v381_v47 = vld [vmem:[#allocation2 + $0x18] sm:$0xff]  ;;  %vm422_vm1 = vcmask 1040384  }
  0xb1   : > { %v367_v40 = vld [vmem:[#allocation2] sm:$0xff]  ;;  %v550_v41 = vunpack.c.l.bf16 %v549_v38  ;;  %v551_v42 = vunpack.c.h.bf16 %v549_v38  ;;  %s683_s17 = smov 126   ;;  %v382_v48 = vld [vmem:[#allocation2 + $0x10] sm:$0xff]  ;;  %v411_v50 = vld [vmem:[#allocation2 + $0x28] sm:$0xff]  ;;  %s539_s11 = sshll.u32 %s735_s22, 2  ;;  %vm424_vm2 = vcmask 1041408  }
  0xb2   : > { %v396_v3 = vld [vmem:[#allocation2 + $0x8] sm:$0xff]  ;;  %s442_s26 = scalar_lea.hbm %s861_s5, %s539_s11  ;;  %vm426_vm3 = vcmask 1042432   ;;  %v428_v32 = vld [vmem:[%s859_s3] sm:$0xf]  ;;  %s444_s8 = sshll.u32 %s217_s12, 4  ;;  %s445_s8 = int_to_ptr.vmem [resolvable:$true] %s444_s8 }
  0xb3   : > { %v369_v43 = vmul.f32 %v551_v42, %v367_v40  ;;  %v601_v44 = vpack.i.bf16 %v551_v42, %v550_v41  ;;  %v368_v45 = vmul.f32 %v550_v41, %v366_v39  ;;  %s446_s9 = sshll.u32 %s442_s26, 4  ;;  %s432_s10 = scalar_lea.sflag [#allocation4], %s215_s30  ;;  %s447_s9 = int_to_ptr.hbm [resolvable:$true] %s446_s9 }
  0xb4   : > { %s630_s13 = sshra.s32 %s447_s9, 4  ;;  %s631_s13 = int_to_ptr.hbm [resolvable:$true] %s630_s13 }
  0xb5   : > { %602 = vrot.lane.b32.xlu0 %v601_v44, %s681_s15  ;;  %v370_v46 = vadd.f32 %v369_v43, %v368_v45  ;;  %612 = vrot.lane.b32.xlu1 %v601_v44, %s682_s16  ;;  %v397_v4 = vld [vmem:[#allocation2 + $0x20] sm:$0xff]  ;;  %s632_s14 = scalar_lea.hbm %s631_s13, 4  ;;  %p637_p1 = scmp.lt.s32.totalorder %s631_s13, %s861_s5 }
  0xb6   : > { %v412_v51 = vld [vmem:[#allocation2 + $0x38] sm:$0xff]  ;;  %p633_p12 = scmp.ne.s32.totalorder %s631_s13, %s632_s14 }
  0xb7   : > { %v371_v57 = vrot.slane %v370_v46, 4 }
  0xb8   : > { %p634_p13 = pnand %p633_p12, %p752_p5 }
  0xb9   : > { %v372_v0 = vadd.f32 %v371_v57, %v370_v46 }
  0xba   : > { %p635_p0 = pneg %p634_p13 }
  0xbb   : > { %v373_v10 = vrot.slane %v372_v0, 2 }
  0xbd   : > { %607 = vrot.lane.b32.xlu0 %v601_v44, %s683_s17  ;;  %v374_v17 = vadd.f32 %v373_v10, %v372_v0  ;;  %s636_s17 = scalar_lea.hbm %s861_s5, 16 }
  0xbe   : > { %p638_p2 = scmp.lt.s32.totalorder %s636_s17, %s632_s14 }
  0xbf   : > { %v375_v22 = vrot.slane %v374_v17, 1 }
  0xc0   : > { %p639_p3 = por %p638_p2, %p637_p1 }
  0xc1   : > { %v376_v27 = vadd.f32 %v375_v22, %v374_v17 }
  0xc2   : > { %p640_p4 = pnand %p639_p3, %p635_p0 }
 0x127   : > { %v603_v49 = vpop.permute.xlu0 %602  ;;  %v613_v52 = vpop.permute.xlu1 %612 }
 0x128   : > { %v605_v53 = vunpack.i.h.bf16 %v603_v49  ;;  %v604_v54 = vunpack.i.l.bf16 %v603_v49  ;;  %v615_v55 = vunpack.i.h.bf16 %v613_v52  ;;  %v614_v56 = vunpack.i.l.bf16 %v613_v52 }
 0x12a   : > { %v384_v58 = vmul.f32 %v605_v53, %v382_v48  ;;  %v383_v59 = vmul.f32 %v604_v54, %v381_v47  ;;  %v414_v60 = vmul.f32 %v615_v55, %v412_v51  ;;  %v413_v61 = vmul.f32 %v614_v56, %v411_v50 }
 0x12c   : > { %v385_v62 = vadd.f32 %v384_v58, %v383_v59  ;;  %v415_v63 = vadd.f32 %v414_v60, %v413_v61 }
 0x12e   : > { %v386_v1 = vrot.slane %v385_v62, 4  ;;  %v416_v2 = vrot.slane %v415_v63, 4 }
 0x12f   : > { %v608_v5 = vpop.permute.xlu0 %607 }
 0x130   : > { %v387_v6 = vadd.f32 %v386_v1, %v385_v62  ;;  %v610_v7 = vunpack.i.h.bf16 %v608_v5  ;;  %v609_v8 = vunpack.i.l.bf16 %v608_v5  ;;  %v417_v9 = vadd.f32 %v416_v2, %v415_v63 }
 0x132   : > { %v388_v11 = vrot.slane %v387_v6, 2  ;;  %v399_v12 = vmul.f32 %v610_v7, %v397_v4  ;;  %v398_v13 = vmul.f32 %v609_v8, %v396_v3  ;;  %v418_v16 = vrot.slane %v417_v9, 2 }
 0x134   : > { %v400_v14 = vadd.f32 %v399_v12, %v398_v13  ;;  %v389_v15 = vadd.f32 %v388_v11, %v387_v6  ;;  %v419_v21 = vadd.f32 %v418_v16, %v417_v9 }
 0x136   : > { %v401_v18 = vrot.slane %v400_v14, 4  ;;  %v390_v20 = vrot.slane %v389_v15, 1  ;;  %v420_v26 = vrot.slane %v419_v21, 1 }
 0x138   : > { %v402_v19 = vadd.f32 %v401_v18, %v400_v14  ;;  %v391_v25 = vadd.f32 %v390_v20, %v389_v15  ;;  %v421_v30 = vadd.f32 %v420_v26, %v419_v21 }
 0x13a   : > { %v403_v23 = vrot.slane %v402_v19, 2  ;;  %v423_v31 = vsel %vm422_vm1, %v376_v27, %v391_v25 }
 0x13c   : > { %v404_v24 = vadd.f32 %v403_v23, %v402_v19 }
 0x13e   : > { %v405_v28 = vrot.slane %v404_v24, 1 }
 0x140   : > { %v406_v29 = vadd.f32 %v405_v28, %v404_v24 }
 0x142   : > { %v425_v33 = vsel %vm424_vm2, %v423_v31, %v406_v29 }
 0x143   : > { %v427_v34 = vsel %vm426_vm3, %v425_v33, %v421_v30 }
 0x144   : > { %v429_v35 = vmul.f32 %v428_v32, %v427_v34 }
 0x146   : > { %430 = vst [vmem:[%s217_s12] sm:$0xf] %v429_v35 }
 0x147   : > { %643 = shalt.err (!%p640_p4)
}
 0x148   : > { %555 = dma.vmem_to_hbm [thread:$0]  (%p752_p5), %s445_s8, 64, %s447_s9, %s432_s10  }
 0x149 PF: > { %p561_p7 = scmp.ge.s32.totalorder %s678_s21, 2  ;;  %s458_s30 = sand.u32 1, %s666_s18  }
 0x14a   : > { %s459_s6 = scalar_lea.sflag [#allocation4], %s458_s30 }
 0x14b   : > { %p558_p8 = pnand %p561_p7, %p756_p6 }
 0x14d   : > { %p559_p9 = pneg %p558_p8 }
 0x14f   : > { %661 = dma.done.wait (%p559_p9), %s459_s6, 64  }
 0x150   : > { %663 = vsyncadd (%p559_p9), %s459_s6, 4294967232  ;;  %p15_p10 = scmp.ge.s32.totalorder %s739_s24, 6   ;;  %s864_s18 = smov %s670_s19 }
 0x151   : > { %s865_s19 = smov %s674_s20  ;;  %s866_s20 = smov %s750_s27 }
 0x152   : > { %s867_s21 = smov %s739_s24  ;;  %17 = sbr.rel (!%p15_p10) target bundleno = 3 (0x3), region = 79 }
 0x157   :  { %465 = vsyncpa [#allocation4], 1 }
 0x158   :  { %467 = vsyncpa [#allocation4 + $0x1], 1 }

</bundles_post_ra>
